<compile_context>
chip_gen: v6e
topology: v6e:2x2x1
jax: 0.10.0
libtpu: 0.0.40
codegen_flags: <defaults>
</compile_context>

<pallas_src>
import functools
import math

import jax
import jax.numpy as jnp
from jax.experimental import pallas as pl
from jax.experimental.pallas import tpu as pltpu


# ---------------------------------------------------------------------------
# Tiling / VMEM helpers
# ---------------------------------------------------------------------------

def _row_tile(M, target=512):
    """Largest row tile <= target that divides M (multiple of 8), else full M."""
    if M <= target:
        return M
    for t in (target, 256, 128, 64, 32, 16, 8):
        if M % t == 0:
            return t
    return M


def _q_tile(S, target=512):
    """Query tile for attention: divides S, multiple of 8, else full S."""
    if S <= target:
        return S
    for t in (target, 256, 128, 64, 32, 16, 8):
        if S % t == 0:
            return t
    return S


def _hidden_tile(H, target=2048):
    """FFN hidden-dim reduction tile: divides H, multiple of 128, else full H."""
    if H <= target:
        return H
    for t in (target, 1024, 512, 256, 128):
        if H % t == 0:
            return t
    return H


def _vmem_limit(need_bytes):
    """Scoped-VMEM budget from tile/weight math (+50% headroom). Defaults are
    only 16 MiB (v5e) / 32 MiB (v6e/v7x); cap at 56 MiB so the same budget also
    fits under v7x's 64 MiB physical VMEM."""
    return int(min(max(int(need_bytes * 1.5) + (4 << 20), 32 << 20), 56 << 20))


_SINGLE_BUFFER = None  # lazily probed: does this jax support pl.Buffered(1)?


def _resolve_single_buffer():
    """Probe once whether constant-index operands can be single-buffered via
    pipeline_mode=pl.Buffered(1); fall back to default double-buffering."""
    global _SINGLE_BUFFER
    if _SINGLE_BUFFER is not None:
        return _SINGLE_BUFFER
    try:
        def _k(x_ref, o_ref):
            o_ref[...] = x_ref[...] + 1.0

        f = pl.pallas_call(
            _k,
            out_shape=jax.ShapeDtypeStruct((16, 128), jnp.float32),
            grid=(2,),
            in_specs=[pl.BlockSpec((8, 128), lambda i: (0, 0),
                                   pipeline_mode=pl.Buffered(buffer_count=1))],
            out_specs=pl.BlockSpec((8, 128), lambda i: (i, 0)),
        )
        jax.block_until_ready(f(jnp.zeros((8, 128), jnp.float32)))
        _SINGLE_BUFFER = True
    except Exception:   # older jax / unsupported buffer_count=1
        _SINGLE_BUFFER = False
    return _SINGLE_BUFFER


def _spec(block_shape, index_map, *, constant=False):
    """BlockSpec; constant operands (fetched once) get single-buffering when
    supported, halving their VMEM footprint."""
    if constant and _resolve_single_buffer():
        return pl.BlockSpec(block_shape, index_map,
                            pipeline_mode=pl.Buffered(buffer_count=1))
    return pl.BlockSpec(block_shape, index_map)


def _wbuf():
    return 1 if _resolve_single_buffer() else 2


# ---------------------------------------------------------------------------
# Fused QKV projection:  y = x @ W_qkv + b_qkv      (row-tiled, bf16 out)
# ---------------------------------------------------------------------------

def _qkv_kernel(x_ref, w_ref, b_ref, o_ref):
    acc = jnp.dot(x_ref[...].astype(jnp.bfloat16), w_ref[...],
                  preferred_element_type=jnp.float32)
    o_ref[...] = (acc + b_ref[...]).astype(o_ref.dtype)


def fused_qkv(x, w, b):
    M, K = x.shape
    N = w.shape[1]
    tm = _row_tile(M)
    assert tm == M or tm % 8 == 0
    need = (2 * (tm * K * 4 + tm * N * 2)
            + _wbuf() * K * N * w.dtype.itemsize + 2 * N * 4)
    return pl.pallas_call(
        _qkv_kernel,
        out_shape=jax.ShapeDtypeStruct((M, N), jnp.bfloat16),
        grid=(pl.cdiv(M, tm),),
        in_specs=[pl.BlockSpec((tm, K), lambda i: (i, 0)),
                  _spec((K, N), lambda i: (0, 0), constant=True),
                  _spec((1, N), lambda i: (0, 0), constant=True)],
        out_specs=pl.BlockSpec((tm, N), lambda i: (i, 0)),
        compiler_params=pltpu.CompilerParams(
            dimension_semantics=("parallel",),
            vmem_limit_bytes=_vmem_limit(need)),
    )(x, w, b.reshape(1, N))


# ---------------------------------------------------------------------------
# Multi-head scaled dot-product attention.
# Grid = (batch, head, q_tiles); K/V for the (batch, head) stay VMEM-resident
# across query tiles (constant index_map over the q-tile axis).
# ---------------------------------------------------------------------------

def _attn_kernel(q_ref, k_ref, v_ref, o_ref, attn_ref):
    # TODO(synk): slf_attn_mask path not implemented (module default is None).
    # 1/sqrt(d_k) is folded into the Q projection; contract last axes directly
    # (no k.T relayout).
    q = q_ref[0, 0]                                              # (tq, d_k) bf16
    k = k_ref[0, 0]                                              # (S,  d_k) bf16
    v = v_ref[0, 0]                                              # (S,  d_v) bf16
    s = jax.lax.dot_general(q, k, (((1,), (1,)), ((), ())),
                            preferred_element_type=jnp.float32)  # (tq, S)
    m = jnp.max(s, axis=-1, keepdims=True)
    e = jnp.exp(s - m)
    p = e * pl.reciprocal(jnp.sum(e, axis=-1, keepdims=True), approx=True)
    attn_ref[0, 0] = p.astype(attn_ref.dtype)
    o_ref[0, 0] = jnp.dot(p.astype(v.dtype), v,
                          preferred_element_type=jnp.float32).astype(o_ref.dtype)


def multi_head_attention(q, k, v, *, attn_dtype=jnp.bfloat16):
    """q,k: (B, H, S, d_k), v: (B, H, S, d_v) ->
       o: (B, H, S, d_v), attn: (B, H, S, S) in attn_dtype (bf16 by default)."""
    B, H, S, d_k = q.shape
    d_v = v.shape[-1]
    tq = _q_tile(S)
    assert tq == S or (tq % 8 == 0 and S % tq == 0)
    abytes = jnp.dtype(attn_dtype).itemsize
    need = (2 * (tq * d_k + S * d_k + S * d_v + tq * d_v) * q.dtype.itemsize
            + 2 * tq * S * abytes + 2 * tq * S * 4)
    return pl.pallas_call(
        _attn_kernel,
        out_shape=(jax.ShapeDtypeStruct((B, H, S, d_v), q.dtype),
                   jax.ShapeDtypeStruct((B, H, S, S), attn_dtype)),
        grid=(B, H, S // tq),
        in_specs=[pl.BlockSpec((1, 1, tq, d_k), lambda b, h, qi: (b, h, qi, 0)),
                  pl.BlockSpec((1, 1, S, d_k), lambda b, h, qi: (b, h, 0, 0)),
                  pl.BlockSpec((1, 1, S, d_v), lambda b, h, qi: (b, h, 0, 0))],
        out_specs=(pl.BlockSpec((1, 1, tq, d_v), lambda b, h, qi: (b, h, qi, 0)),
                   pl.BlockSpec((1, 1, tq, S), lambda b, h, qi: (b, h, qi, 0))),
        compiler_params=pltpu.CompilerParams(
            dimension_semantics=("parallel", "parallel", "arbitrary"),
            vmem_limit_bytes=_vmem_limit(need)),
    )(q, k, v)


# ---------------------------------------------------------------------------
# Fused out-projection + residual add + LayerNorm      (row-tiled)
# ---------------------------------------------------------------------------

def _proj_add_ln_kernel(o_ref, res_ref, w_ref, b_ref, g_ref, bln_ref, y_ref, *, eps):
    y = jnp.dot(o_ref[...], w_ref[...],                      # bf16 @ bf16 -> f32
                preferred_element_type=jnp.float32)
    y = y + b_ref[...] + res_ref[...]
    mu = jnp.mean(y, axis=-1, keepdims=True)
    var = jnp.mean(jnp.square(y - mu), axis=-1, keepdims=True)
    yhat = (y - mu) * jax.lax.rsqrt(var + eps)
    y_ref[...] = (yhat * g_ref[...] + bln_ref[...]).astype(y_ref.dtype)


def out_proj_add_layernorm(o, residual, w, b, gamma, beta, *, eps=1e-5):
    M, K = o.shape
    D = w.shape[1]
    tm = _row_tile(M)
    assert tm == M or tm % 8 == 0
    kern = functools.partial(_proj_add_ln_kernel, eps=eps)
    need = (2 * (tm * K * o.dtype.itemsize + tm * D * 4 + tm * D * 4)
            + _wbuf() * K * D * w.dtype.itemsize + 4 * D * 4)
    return pl.pallas_call(
        kern,
        out_shape=jax.ShapeDtypeStruct((M, D), jnp.float32),
        grid=(pl.cdiv(M, tm),),
        in_specs=[pl.BlockSpec((tm, K), lambda i: (i, 0)),
                  pl.BlockSpec((tm, D), lambda i: (i, 0)),
                  _spec((K, D), lambda i: (0, 0), constant=True),
                  _spec((1, D), lambda i: (0, 0), constant=True),
                  _spec((1, D), lambda i: (0, 0), constant=True),
                  _spec((1, D), lambda i: (0, 0), constant=True)],
        out_specs=pl.BlockSpec((tm, D), lambda i: (i, 0)),
        compiler_params=pltpu.CompilerParams(
            dimension_semantics=("parallel",),
            vmem_limit_bytes=_vmem_limit(need)),
    )(o, residual, w, b.reshape(1, D), gamma.reshape(1, D), beta.reshape(1, D))


# ---------------------------------------------------------------------------
# Fused position-wise FFN + residual + LayerNorm
# Grid = (row_tiles, hidden_tiles): hidden dim is a reduction axis with an f32
# accumulator in VMEM scratch (bounds VMEM on v7x for large d_hidden).
# ---------------------------------------------------------------------------

def _ffn_kernel(x_ref, w1_ref, b1_ref, w2_ref, b2_ref, g_ref, bln_ref, o_ref,
                acc_ref, *, eps):
    k = pl.program_id(1)
    x = x_ref[...]                                               # (tm, D) f32

    @pl.when(k == 0)
    def _():
        acc_ref[...] = x + b2_ref[...]                           # residual + b2

    h = jnp.dot(x.astype(jnp.bfloat16), w1_ref[...],
                preferred_element_type=jnp.float32) + b1_ref[...]
    h = jnp.maximum(h, 0.0)                                      # ReLU
    acc_ref[...] += jnp.dot(h.astype(jnp.bfloat16), w2_ref[...],
                            preferred_element_type=jnp.float32)

    @pl.when(k == pl.num_programs(1) - 1)
    def _():
        y = acc_ref[...]
        mu = jnp.mean(y, axis=-1, keepdims=True)
        var = jnp.mean(jnp.square(y - mu), axis=-1, keepdims=True)
        yhat = (y - mu) * jax.lax.rsqrt(var + eps)
        o_ref[...] = (yhat * g_ref[...] + bln_ref[...]).astype(o_ref.dtype)


def positionwise_ffn(x, w1, b1, w2, b2, gamma, beta, *, eps=1e-5):
    M, D = x.shape
    H = w1.shape[1]
    tm = _row_tile(M)
    th = _hidden_tile(H)
    nk = H // th
    assert tm == M or tm % 8 == 0
    assert th == H or th % 128 == 0
    kern = functools.partial(_ffn_kernel, eps=eps)
    wconst = (nk == 1)
    wbuf = 1 if (wconst and _resolve_single_buffer()) else 2
    need = (2 * (tm * D * 4 + tm * D * 4)
            + wbuf * (D * th + th * D) * w1.dtype.itemsize
            + 2 * th * 4 + tm * th * 4 + tm * D * 4 + 3 * D * 4)
    return pl.pallas_call(
        kern,
        out_shape=jax.ShapeDtypeStruct((M, D), jnp.float32),
        grid=(pl.cdiv(M, tm), nk),
        in_specs=[pl.BlockSpec((tm, D), lambda i, k: (i, 0)),
                  _spec((D, th), lambda i, k: (0, k), constant=wconst),
                  _spec((1, th), lambda i, k: (0, k), constant=wconst),
                  _spec((th, D), lambda i, k: (k, 0), constant=wconst),
                  _spec((1, D), lambda i, k: (0, 0), constant=True),
                  _spec((1, D), lambda i, k: (0, 0), constant=True),
                  _spec((1, D), lambda i, k: (0, 0), constant=True)],
        out_specs=pl.BlockSpec((tm, D), lambda i, k: (i, 0)),
        scratch_shapes=[pltpu.VMEM((tm, D), jnp.float32)],
        compiler_params=pltpu.CompilerParams(
            dimension_semantics=("parallel", "arbitrary"),
            vmem_limit_bytes=_vmem_limit(need)),
    )(x, w1, b1.reshape(1, H), w2, b2.reshape(1, D),
      gamma.reshape(1, D), beta.reshape(1, D))


# ---------------------------------------------------------------------------
# EncoderLayer forward
# ---------------------------------------------------------------------------

def encoder_layer_forward(params, enc_input, *, n_heads, d_k, d_v, eps=1e-5):
    # TODO(synk): slf_attn_mask path not implemented (module default is None).
    B, S, D = enc_input.shape
    M = B * S
    x2d = enc_input.reshape(M, D)

    # Fused Q/K/V projection, bf16 output; 1/sqrt(d_k) folded into Q columns.
    qkv = fused_qkv(x2d, params["w_qkv"], params["b_qkv"])   # (M, H*(2dk+dv)) bf16

    hdk, hdv = n_heads * d_k, n_heads * d_v
    q = qkv[:, :hdk].reshape(B, S, n_heads, d_k).transpose(0, 2, 1, 3)
    k = qkv[:, hdk:2 * hdk].reshape(B, S, n_heads, d_k).transpose(0, 2, 1, 3)
    v = qkv[:, 2 * hdk:].reshape(B, S, n_heads, d_v).transpose(0, 2, 1, 3)

    o, attn = multi_head_attention(q, k, v)                  # bf16 o / bf16 attn
    o2d = o.transpose(0, 2, 1, 3).reshape(M, hdv)            # heads concatenated

    # dropout = identity at inference
    attn_out = out_proj_add_layernorm(o2d, x2d, params["w_o"], params["b_o"],
                                      params["ln1_g"], params["ln1_b"], eps=eps)

    out = positionwise_ffn(attn_out, params["w_1"], params["b_1"],
                           params["w_2"], params["b_2"],
                           params["ln2_g"], params["ln2_b"], eps=eps)

    return out.reshape(B, S, D), attn


def init_params(key, d_model, d_hidden, n_heads, d_k, d_v):
    ks = jax.random.split(key, 12)

    def dense(k, fan_in, fan_out):
        return (jax.random.normal(k, (fan_in, fan_out), jnp.float32)
                / math.sqrt(fan_in))

    def bias(k, n):
        return 0.01 * jax.random.normal(k, (n,), jnp.float32)

    w_q, b_q = dense(ks[0], d_model, n_heads * d_k), bias(ks[1], n_heads * d_k)
    w_k, b_k = dense(ks[2], d_model, n_heads * d_k), bias(ks[3], n_heads * d_k)
    w_v, b_v = dense(ks[4], d_model, n_heads * d_v), bias(ks[5], n_heads * d_v)

    # Fold the attention 1/sqrt(d_k) scale into the Q projection (done once).
    scale = 1.0 / math.sqrt(d_k)
    w_q, b_q = w_q * scale, b_q * scale

    return {
        # bf16 matmul weights: MXU-native, half the HBM/VMEM bytes.
        "w_qkv": jnp.concatenate([w_q, w_k, w_v], axis=1).astype(jnp.bfloat16),
        "b_qkv": jnp.concatenate([b_q, b_k, b_v], axis=0),            # f32
        "w_o": dense(ks[6], n_heads * d_v, d_model).astype(jnp.bfloat16),
        "b_o": bias(ks[7], d_model),
        "ln1_g": jnp.ones((d_model,), jnp.float32),
        "ln1_b": jnp.zeros((d_model,), jnp.float32),
        "w_1": dense(ks[8], d_model, d_hidden).astype(jnp.bfloat16),
        "b_1": bias(ks[9], d_hidden),
        "w_2": dense(ks[10], d_hidden, d_model).astype(jnp.bfloat16),
        "b_2": bias(ks[11], d_model),
        "ln2_g": jnp.ones((d_model,), jnp.float32),
        "ln2_b": jnp.zeros((d_model,), jnp.float32),
    }


if __name__ == "__main__":
    B, S = 2, 8
    D_MODEL, D_HIDDEN, N_HEADS, D_K, D_V = 32, 64, 4, 8, 8

    key = jax.random.PRNGKey(0)
    k_param, k_input = jax.random.split(key)
    params = init_params(k_param, D_MODEL, D_HIDDEN, N_HEADS, D_K, D_V)
    enc_input = jax.random.normal(k_input, (B, S, D_MODEL), jnp.float32)

    fwd = jax.jit(functools.partial(encoder_layer_forward,
                                    n_heads=N_HEADS, d_k=D_K, d_v=D_V))
    output, slf_attn = fwd(params, enc_input)
    jax.block_until_ready((output, slf_attn))

    assert output.shape == (B, S, D_MODEL)
    assert slf_attn.shape == (B, N_HEADS, S, S)
    assert bool(jnp.all(jnp.isfinite(output)))
    assert bool(jnp.all(jnp.isfinite(slf_attn.astype(jnp.float32))))
    print("KERNEL_OK")
</pallas_src>

<mosaic_0001>
module attributes {stable_mosaic.version = 11 : i64} {
  func.func @_qkv_kernel(%arg0: i32, %arg1: memref<16x32xf32, #tpu.memory_space<vmem>>, %arg2: memref<32x96xbf16, #tpu.memory_space<vmem>>, %arg3: memref<1x96xf32, #tpu.memory_space<vmem>>, %arg4: memref<16x96xbf16, #tpu.memory_space<vmem>>) attributes {dimension_semantics = [#tpu.dimension_semantics<parallel>], iteration_bounds = array<i64: 1>, scalar_prefetch = 0 : i64, scratch_operands = 0 : i64, tpu.core_type = #tpu.core_type<tc>, window_params = [{transform_indices = @transform_0, window_bounds = array<i64: 16, 32>}, {pipeline_mode = #tpu.pipeline_mode<synchronous>, transform_indices = @transform_1, window_bounds = array<i64: 32, 96>}, {pipeline_mode = #tpu.pipeline_mode<synchronous>, transform_indices = @transform_2, window_bounds = array<i64: 1, 96>}, {transform_indices = @transform_3, window_bounds = array<i64: 16, 96>}]} {
    %c0 = arith.constant 0 : index
    %c0_0 = arith.constant 0 : index
    %0 = vector.load %arg1[%c0, %c0_0] : memref<16x32xf32, #tpu.memory_space<vmem>>, vector<16x32xf32>
    %1 = arith.truncf %0 : vector<16x32xf32> to vector<16x32xbf16>
    %c0_1 = arith.constant 0 : index
    %c0_2 = arith.constant 0 : index
    %2 = vector.load %arg2[%c0_1, %c0_2] : memref<32x96xbf16, #tpu.memory_space<vmem>>, vector<32x96xbf16>
    %cst = arith.constant dense<0.000000e+00> : vector<16x96xf32>
    %3 = tpu.matmul %1, %2, %cst {dimension_numbers = #tpu.dot_dimension_numbers<[1], [0], [0], [1], [0, 0, 1, 1], [], []>} : vector<16x32xbf16>, vector<32x96xbf16>, vector<16x96xf32> -> vector<16x96xf32>
    %c0_3 = arith.constant 0 : index
    %c0_4 = arith.constant 0 : index
    %4 = vector.load %arg3[%c0_3, %c0_4] : memref<1x96xf32, #tpu.memory_space<vmem>>, vector<1x96xf32>
    %5 = vector.broadcast %4 : vector<1x96xf32> to vector<16x96xf32>
    %6 = arith.addf %3, %5 : vector<16x96xf32>
    %7 = arith.truncf %6 : vector<16x96xf32> to vector<16x96xbf16>
    %c0_5 = arith.constant 0 : index
    %c0_6 = arith.constant 0 : index
    %8 = vector.load %arg4[%c0_5, %c0_6] : memref<16x96xbf16, #tpu.memory_space<vmem>>, vector<16x96xbf16>
    tpu.vector_store %arg4[%c0_5, %c0_6], %7 {strides = array<i32>} : memref<16x96xbf16, #tpu.memory_space<vmem>>, vector<16x96xbf16>,
    return
  }
  func.func @transform_0(%arg0: i32) -> (i32, i32) {
    %c0_i32 = arith.constant 0 : i32
    %c0_i32_0 = arith.constant 0 : i32
    return %arg0, %c0_i32 : i32, i32
  }
  func.func @transform_1(%arg0: i32) -> (i32, i32) {
    %c0_i32 = arith.constant 0 : i32
    %c0_i32_0 = arith.constant 0 : i32
    %c0_i32_1 = arith.constant 0 : i32
    return %c0_i32, %c0_i32_0 : i32, i32
  }
  func.func @transform_2(%arg0: i32) -> (i32, i32) {
    %c0_i32 = arith.constant 0 : i32
    %c0_i32_0 = arith.constant 0 : i32
    %c0_i32_1 = arith.constant 0 : i32
    return %c0_i32, %c0_i32_0 : i32, i32
  }
  func.func @transform_3(%arg0: i32) -> (i32, i32) {
    %c0_i32 = arith.constant 0 : i32
    %c0_i32_0 = arith.constant 0 : i32
    return %arg0, %c0_i32 : i32, i32
  }
}

module attributes {stable_mosaic.version = 11 : i64} {
  func.func @_attn_kernel(%arg0: i32, %arg1: i32, %arg2: i32, %arg3: memref<1x1x8x8xbf16, #tpu.memory_space<vmem>>, %arg4: memref<1x1x8x8xbf16, #tpu.memory_space<vmem>>, %arg5: memref<1x1x8x8xbf16, #tpu.memory_space<vmem>>, %arg6: memref<1x1x8x8xbf16, #tpu.memory_space<vmem>>, %arg7: memref<1x1x8x8xbf16, #tpu.memory_space<vmem>>) attributes {dimension_semantics = [#tpu.dimension_semantics<parallel>, #tpu.dimension_semantics<parallel>, #tpu.dimension_semantics<arbitrary>], iteration_bounds = array<i64: 2, 4, 1>, scalar_prefetch = 0 : i64, scratch_operands = 0 : i64, tpu.core_type = #tpu.core_type<tc>, window_params = [{transform_indices = @transform_0, window_bounds = array<i64: 1, 1, 8, 8>}, {transform_indices = @transform_1, window_bounds = array<i64: 1, 1, 8, 8>}, {transform_indices = @transform_2, window_bounds = array<i64: 1, 1, 8, 8>}, {transform_indices = @transform_3, window_bounds = array<i64: 1, 1, 8, 8>}, {transform_indices = @transform_4, window_bounds = array<i64: 1, 1, 8, 8>}]} {
    %c0 = arith.constant 0 : index
    %c0_0 = arith.constant 0 : index
    %c0_1 = arith.constant 0 : index
    %c0_2 = arith.constant 0 : index
    %0 = vector.load %arg3[%c0, %c0_0, %c0_1, %c0_2] : memref<1x1x8x8xbf16, #tpu.memory_space<vmem>>, vector<1x1x8x8xbf16>
    %1 = vector.shape_cast %0 : vector<1x1x8x8xbf16> to vector<8x8xbf16>
    %c0_3 = arith.constant 0 : index
    %c0_4 = arith.constant 0 : index
    %c0_5 = arith.constant 0 : index
    %c0_6 = arith.constant 0 : index
    %2 = vector.load %arg4[%c0_3, %c0_4, %c0_5, %c0_6] : memref<1x1x8x8xbf16, #tpu.memory_space<vmem>>, vector<1x1x8x8xbf16>
    %3 = vector.shape_cast %2 : vector<1x1x8x8xbf16> to vector<8x8xbf16>
    %c0_7 = arith.constant 0 : index
    %c0_8 = arith.constant 0 : index
    %c0_9 = arith.constant 0 : index
    %c0_10 = arith.constant 0 : index
    %4 = vector.load %arg5[%c0_7, %c0_8, %c0_9, %c0_10] : memref<1x1x8x8xbf16, #tpu.memory_space<vmem>>, vector<1x1x8x8xbf16>
    %5 = vector.shape_cast %4 : vector<1x1x8x8xbf16> to vector<8x8xbf16>
    %cst = arith.constant dense<0.000000e+00> : vector<8x8xf32>
    %6 = tpu.matmul %1, %3, %cst {dimension_numbers = #tpu.dot_dimension_numbers<[1], [1], [0], [0], [0, 0, 1, 0], [], []>} : vector<8x8xbf16>, vector<8x8xbf16>, vector<8x8xf32> -> vector<8x8xf32>
    %cst_11 = arith.constant dense<0xFF800000> : vector<8xf32>
    %7 = vector.multi_reduction <maximumf>, %6, %cst_11 [1] : vector<8x8xf32> to vector<8xf32>
    %8 = vector.shape_cast %7 : vector<8xf32> to vector<8x1xf32>
    %9 = vector.broadcast %8 : vector<8x1xf32> to vector<8x8xf32>
    %10 = arith.subf %6, %9 : vector<8x8xf32>
    %11 = math.exp %10 : vector<8x8xf32>
    %cst_12 = arith.constant dense<0.000000e+00> : vector<8xf32>
    %12 = vector.multi_reduction <add>, %11, %cst_12 [1] : vector<8x8xf32> to vector<8xf32>
    %13 = vector.shape_cast %12 : vector<8xf32> to vector<8x1xf32>
    %14 = tpu.reciprocal %13 {approx = true} : vector<8x1xf32> -> vector<8x1xf32>
    %15 = vector.broadcast %14 : vector<8x1xf32> to vector<8x8xf32>
    %16 = arith.mulf %11, %15 : vector<8x8xf32>
    %17 = arith.truncf %16 : vector<8x8xf32> to vector<8x8xbf16>
    %c0_13 = arith.constant 0 : index
    %c0_14 = arith.constant 0 : index
    %c0_15 = arith.constant 0 : index
    %c0_16 = arith.constant 0 : index
    %18 = vector.load %arg7[%c0_13, %c0_14, %c0_15, %c0_16] : memref<1x1x8x8xbf16, #tpu.memory_space<vmem>>, vector<1x1x8x8xbf16>
    %19 = vector.shape_cast %18 : vector<1x1x8x8xbf16> to vector<8x8xbf16>
    %20 = vector.shape_cast %17 : vector<8x8xbf16> to vector<1x1x8x8xbf16>
    tpu.vector_store %arg7[%c0_13, %c0_14, %c0_15, %c0_16], %20 {strides = array<i32>} : memref<1x1x8x8xbf16, #tpu.memory_space<vmem>>, vector<1x1x8x8xbf16>,
    %21 = arith.truncf %16 : vector<8x8xf32> to vector<8x8xbf16>
    %cst_17 = arith.constant dense<0.000000e+00> : vector<8x8xf32>
    %22 = tpu.matmul %21, %5, %cst_17 {dimension_numbers = #tpu.dot_dimension_numbers<[1], [0], [0], [1], [0, 0, 1, 1], [], []>} : vector<8x8xbf16>, vector<8x8xbf16>, vector<8x8xf32> -> vector<8x8xf32>
    %23 = arith.truncf %22 : vector<8x8xf32> to vector<8x8xbf16>
    %c0_18 = arith.constant 0 : index
    %c0_19 = arith.constant 0 : index
    %c0_20 = arith.constant 0 : index
    %c0_21 = arith.constant 0 : index
    %24 = vector.load %arg6[%c0_18, %c0_19, %c0_20, %c0_21] : memref<1x1x8x8xbf16, #tpu.memory_space<vmem>>, vector<1x1x8x8xbf16>
    %25 = vector.shape_cast %24 : vector<1x1x8x8xbf16> to vector<8x8xbf16>
    %26 = vector.shape_cast %23 : vector<8x8xbf16> to vector<1x1x8x8xbf16>
    tpu.vector_store %arg6[%c0_18, %c0_19, %c0_20, %c0_21], %26 {strides = array<i32>} : memref<1x1x8x8xbf16, #tpu.memory_space<vmem>>, vector<1x1x8x8xbf16>,
    return
  }
  func.func @transform_0(%arg0: i32, %arg1: i32, %arg2: i32) -> (i32, i32, i32, i32) {
    %c0_i32 = arith.constant 0 : i32
    %c0_i32_0 = arith.constant 0 : i32
    return %arg0, %arg1, %arg2, %c0_i32 : i32, i32, i32, i32
  }
  func.func @transform_1(%arg0: i32, %arg1: i32, %arg2: i32) -> (i32, i32, i32, i32) {
    %c0_i32 = arith.constant 0 : i32
    %c0_i32_0 = arith.constant 0 : i32
    %c0_i32_1 = arith.constant 0 : i32
    return %arg0, %arg1, %c0_i32, %c0_i32_0 : i32, i32, i32, i32
  }
  func.func @transform_2(%arg0: i32, %arg1: i32, %arg2: i32) -> (i32, i32, i32, i32) {
    %c0_i32 = arith.constant 0 : i32
    %c0_i32_0 = arith.constant 0 : i32
    %c0_i32_1 = arith.constant 0 : i32
    return %arg0, %arg1, %c0_i32, %c0_i32_0 : i32, i32, i32, i32
  }
  func.func @transform_3(%arg0: i32, %arg1: i32, %arg2: i32) -> (i32, i32, i32, i32) {
    %c0_i32 = arith.constant 0 : i32
    %c0_i32_0 = arith.constant 0 : i32
    return %arg0, %arg1, %arg2, %c0_i32 : i32, i32, i32, i32
  }
  func.func @transform_4(%arg0: i32, %arg1: i32, %arg2: i32) -> (i32, i32, i32, i32) {
    %c0_i32 = arith.constant 0 : i32
    %c0_i32_0 = arith.constant 0 : i32
    return %arg0, %arg1, %arg2, %c0_i32 : i32, i32, i32, i32
  }
}

module attributes {stable_mosaic.version = 11 : i64} {
  func.func @_proj_add_ln_kernel(%arg0: i32, %arg1: memref<16x32xbf16, #tpu.memory_space<vmem>>, %arg2: memref<16x32xf32, #tpu.memory_space<vmem>>, %arg3: memref<32x32xbf16, #tpu.memory_space<vmem>>, %arg4: memref<1x32xf32, #tpu.memory_space<vmem>>, %arg5: memref<1x32xf32, #tpu.memory_space<vmem>>, %arg6: memref<1x32xf32, #tpu.memory_space<vmem>>, %arg7: memref<16x32xf32, #tpu.memory_space<vmem>>) attributes {dimension_semantics = [#tpu.dimension_semantics<parallel>], iteration_bounds = array<i64: 1>, scalar_prefetch = 0 : i64, scratch_operands = 0 : i64, tpu.core_type = #tpu.core_type<tc>, window_params = [{transform_indices = @transform_0, window_bounds = array<i64: 16, 32>}, {transform_indices = @transform_1, window_bounds = array<i64: 16, 32>}, {pipeline_mode = #tpu.pipeline_mode<synchronous>, transform_indices = @transform_2, window_bounds = array<i64: 32, 32>}, {pipeline_mode = #tpu.pipeline_mode<synchronous>, transform_indices = @transform_3, window_bounds = array<i64: 1, 32>}, {pipeline_mode = #tpu.pipeline_mode<synchronous>, transform_indices = @transform_4, window_bounds = array<i64: 1, 32>}, {pipeline_mode = #tpu.pipeline_mode<synchronous>, transform_indices = @transform_5, window_bounds = array<i64: 1, 32>}, {transform_indices = @transform_6, window_bounds = array<i64: 16, 32>}]} {
    %c0 = arith.constant 0 : index
    %c0_0 = arith.constant 0 : index
    %0 = vector.load %arg1[%c0, %c0_0] : memref<16x32xbf16, #tpu.memory_space<vmem>>, vector<16x32xbf16>
    %c0_1 = arith.constant 0 : index
    %c0_2 = arith.constant 0 : index
    %1 = vector.load %arg3[%c0_1, %c0_2] : memref<32x32xbf16, #tpu.memory_space<vmem>>, vector<32x32xbf16>
    %cst = arith.constant dense<0.000000e+00> : vector<16x32xf32>
    %2 = tpu.matmul %0, %1, %cst {dimension_numbers = #tpu.dot_dimension_numbers<[1], [0], [0], [1], [0, 0, 1, 1], [], []>} : vector<16x32xbf16>, vector<32x32xbf16>, vector<16x32xf32> -> vector<16x32xf32>
    %c0_3 = arith.constant 0 : index
    %c0_4 = arith.constant 0 : index
    %3 = vector.load %arg4[%c0_3, %c0_4] : memref<1x32xf32, #tpu.memory_space<vmem>>, vector<1x32xf32>
    %4 = vector.broadcast %3 : vector<1x32xf32> to vector<16x32xf32>
    %5 = arith.addf %2, %4 : vector<16x32xf32>
    %c0_5 = arith.constant 0 : index
    %c0_6 = arith.constant 0 : index
    %6 = vector.load %arg2[%c0_5, %c0_6] : memref<16x32xf32, #tpu.memory_space<vmem>>, vector<16x32xf32>
    %7 = arith.addf %5, %6 : vector<16x32xf32>
    %cst_7 = arith.constant dense<0.000000e+00> : vector<16xf32>
    %8 = vector.multi_reduction <add>, %7, %cst_7 [1] : vector<16x32xf32> to vector<16xf32>
    %9 = vector.shape_cast %8 : vector<16xf32> to vector<16x1xf32>
    %cst_8 = arith.constant 3.200000e+01 : f32
    %10 = vector.broadcast %cst_8 : f32 to vector<16x1xf32>
    %11 = arith.divf %9, %10 : vector<16x1xf32>
    %12 = vector.broadcast %11 : vector<16x1xf32> to vector<16x32xf32>
    %13 = arith.subf %7, %12 : vector<16x32xf32>
    %14 = arith.mulf %13, %13 : vector<16x32xf32>
    %cst_9 = arith.constant dense<0.000000e+00> : vector<16xf32>
    %15 = vector.multi_reduction <add>, %14, %cst_9 [1] : vector<16x32xf32> to vector<16xf32>
    %16 = vector.shape_cast %15 : vector<16xf32> to vector<16x1xf32>
    %cst_10 = arith.constant 3.200000e+01 : f32
    %17 = vector.broadcast %cst_10 : f32 to vector<16x1xf32>
    %18 = arith.divf %16, %17 : vector<16x1xf32>
    %19 = vector.broadcast %11 : vector<16x1xf32> to vector<16x32xf32>
    %20 = arith.subf %7, %19 : vector<16x32xf32>
    %cst_11 = arith.constant 9.99999974E-6 : f32
    %21 = vector.broadcast %cst_11 : f32 to vector<16x1xf32>
    %22 = arith.addf %18, %21 : vector<16x1xf32>
    %23 = math.rsqrt %22 : vector<16x1xf32>
    %24 = vector.broadcast %23 : vector<16x1xf32> to vector<16x32xf32>
    %25 = arith.mulf %20, %24 : vector<16x32xf32>
    %c0_12 = arith.constant 0 : index
    %c0_13 = arith.constant 0 : index
    %26 = vector.load %arg5[%c0_12, %c0_13] : memref<1x32xf32, #tpu.memory_space<vmem>>, vector<1x32xf32>
    %27 = vector.broadcast %26 : vector<1x32xf32> to vector<16x32xf32>
    %28 = arith.mulf %25, %27 : vector<16x32xf32>
    %c0_14 = arith.constant 0 : index
    %c0_15 = arith.constant 0 : index
    %29 = vector.load %arg6[%c0_14, %c0_15] : memref<1x32xf32, #tpu.memory_space<vmem>>, vector<1x32xf32>
    %30 = vector.broadcast %29 : vector<1x32xf32> to vector<16x32xf32>
    %31 = arith.addf %28, %30 : vector<16x32xf32>
    %c0_16 = arith.constant 0 : index
    %c0_17 = arith.constant 0 : index
    %32 = vector.load %arg7[%c0_16, %c0_17] : memref<16x32xf32, #tpu.memory_space<vmem>>, vector<16x32xf32>
    tpu.vector_store %arg7[%c0_16, %c0_17], %31 {strides = array<i32>} : memref<16x32xf32, #tpu.memory_space<vmem>>, vector<16x32xf32>,
    return
  }
  func.func @transform_0(%arg0: i32) -> (i32, i32) {
    %c0_i32 = arith.constant 0 : i32
    %c0_i32_0 = arith.constant 0 : i32
    return %arg0, %c0_i32 : i32, i32
  }
  func.func @transform_1(%arg0: i32) -> (i32, i32) {
    %c0_i32 = arith.constant 0 : i32
    %c0_i32_0 = arith.constant 0 : i32
    return %arg0, %c0_i32 : i32, i32
  }
  func.func @transform_2(%arg0: i32) -> (i32, i32) {
    %c0_i32 = arith.constant 0 : i32
    %c0_i32_0 = arith.constant 0 : i32
    %c0_i32_1 = arith.constant 0 : i32
    return %c0_i32, %c0_i32_0 : i32, i32
  }
  func.func @transform_3(%arg0: i32) -> (i32, i32) {
    %c0_i32 = arith.constant 0 : i32
    %c0_i32_0 = arith.constant 0 : i32
    %c0_i32_1 = arith.constant 0 : i32
    return %c0_i32, %c0_i32_0 : i32, i32
  }
  func.func @transform_4(%arg0: i32) -> (i32, i32) {
    %c0_i32 = arith.constant 0 : i32
    %c0_i32_0 = arith.constant 0 : i32
    %c0_i32_1 = arith.constant 0 : i32
    return %c0_i32, %c0_i32_0 : i32, i32
  }
  func.func @transform_5(%arg0: i32) -> (i32, i32) {
    %c0_i32 = arith.constant 0 : i32
    %c0_i32_0 = arith.constant 0 : i32
    %c0_i32_1 = arith.constant 0 : i32
    return %c0_i32, %c0_i32_0 : i32, i32
  }
  func.func @transform_6(%arg0: i32) -> (i32, i32) {
    %c0_i32 = arith.constant 0 : i32
    %c0_i32_0 = arith.constant 0 : i32
    return %arg0, %c0_i32 : i32, i32
  }
}

module attributes {stable_mosaic.version = 11 : i64} {
  func.func @_ffn_kernel(%arg0: i32, %arg1: i32, %arg2: memref<16x32xf32, #tpu.memory_space<vmem>>, %arg3: memref<32x64xbf16, #tpu.memory_space<vmem>>, %arg4: memref<1x64xf32, #tpu.memory_space<vmem>>, %arg5: memref<64x32xbf16, #tpu.memory_space<vmem>>, %arg6: memref<1x32xf32, #tpu.memory_space<vmem>>, %arg7: memref<1x32xf32, #tpu.memory_space<vmem>>, %arg8: memref<1x32xf32, #tpu.memory_space<vmem>>, %arg9: memref<16x32xf32, #tpu.memory_space<vmem>>, %arg10: memref<16x32xf32, #tpu.memory_space<vmem>>) attributes {dimension_semantics = [#tpu.dimension_semantics<parallel>, #tpu.dimension_semantics<arbitrary>], iteration_bounds = array<i64: 1, 1>, scalar_prefetch = 0 : i64, scratch_operands = 1 : i64, tpu.core_type = #tpu.core_type<tc>, window_params = [{transform_indices = @transform_0, window_bounds = array<i64: 16, 32>}, {pipeline_mode = #tpu.pipeline_mode<synchronous>, transform_indices = @transform_1, window_bounds = array<i64: 32, 64>}, {pipeline_mode = #tpu.pipeline_mode<synchronous>, transform_indices = @transform_2, window_bounds = array<i64: 1, 64>}, {pipeline_mode = #tpu.pipeline_mode<synchronous>, transform_indices = @transform_3, window_bounds = array<i64: 64, 32>}, {pipeline_mode = #tpu.pipeline_mode<synchronous>, transform_indices = @transform_4, window_bounds = array<i64: 1, 32>}, {pipeline_mode = #tpu.pipeline_mode<synchronous>, transform_indices = @transform_5, window_bounds = array<i64: 1, 32>}, {pipeline_mode = #tpu.pipeline_mode<synchronous>, transform_indices = @transform_6, window_bounds = array<i64: 1, 32>}, {transform_indices = @transform_7, window_bounds = array<i64: 16, 32>}]} {
    %c0 = arith.constant 0 : index
    %c0_0 = arith.constant 0 : index
    %0 = vector.load %arg2[%c0, %c0_0] : memref<16x32xf32, #tpu.memory_space<vmem>>, vector<16x32xf32>
    %c0_i32 = arith.constant 0 : i32
    %1 = arith.cmpi eq, %arg1, %c0_i32 : i32
    %2 = arith.extui %1 : i1 to i32
    %c0_i32_1 = arith.constant 0 : i32
    %3 = arith.cmpi ne, %2, %c0_i32_1 : i32
    scf.if %3 {
      %c0_16 = arith.constant 0 : index
      %c0_17 = arith.constant 0 : index
      %21 = vector.load %arg6[%c0_16, %c0_17] : memref<1x32xf32, #tpu.memory_space<vmem>>, vector<1x32xf32>
      %22 = vector.broadcast %21 : vector<1x32xf32> to vector<16x32xf32>
      %23 = arith.addf %0, %22 : vector<16x32xf32>
      %c0_18 = arith.constant 0 : index
      %c0_19 = arith.constant 0 : index
      %24 = vector.load %arg10[%c0_18, %c0_19] : memref<16x32xf32, #tpu.memory_space<vmem>>, vector<16x32xf32>
      tpu.vector_store %arg10[%c0_18, %c0_19], %23 {strides = array<i32>} : memref<16x32xf32, #tpu.memory_space<vmem>>, vector<16x32xf32>,
    } else {
    }
    %4 = arith.truncf %0 : vector<16x32xf32> to vector<16x32xbf16>
    %c0_2 = arith.constant 0 : index
    %c0_3 = arith.constant 0 : index
    %5 = vector.load %arg3[%c0_2, %c0_3] : memref<32x64xbf16, #tpu.memory_space<vmem>>, vector<32x64xbf16>
    %cst = arith.constant dense<0.000000e+00> : vector<16x64xf32>
    %6 = tpu.matmul %4, %5, %cst {dimension_numbers = #tpu.dot_dimension_numbers<[1], [0], [0], [1], [0, 0, 1, 1], [], []>} : vector<16x32xbf16>, vector<32x64xbf16>, vector<16x64xf32> -> vector<16x64xf32>
    %c0_4 = arith.constant 0 : index
    %c0_5 = arith.constant 0 : index
    %7 = vector.load %arg4[%c0_4, %c0_5] : memref<1x64xf32, #tpu.memory_space<vmem>>, vector<1x64xf32>
    %8 = vector.broadcast %7 : vector<1x64xf32> to vector<16x64xf32>
    %9 = arith.addf %6, %8 : vector<16x64xf32>
    %cst_6 = arith.constant 0.000000e+00 : f32
    %10 = vector.broadcast %cst_6 : f32 to vector<16x64xf32>
    %11 = arith.maximumf %9, %10 : vector<16x64xf32>
    %c0_7 = arith.constant 0 : index
    %c0_8 = arith.constant 0 : index
    %12 = vector.load %arg10[%c0_7, %c0_8] : memref<16x32xf32, #tpu.memory_space<vmem>>, vector<16x32xf32>
    %13 = arith.truncf %11 : vector<16x64xf32> to vector<16x64xbf16>
    %c0_9 = arith.constant 0 : index
    %c0_10 = arith.constant 0 : index
    %14 = vector.load %arg5[%c0_9, %c0_10] : memref<64x32xbf16, #tpu.memory_space<vmem>>, vector<64x32xbf16>
    %cst_11 = arith.constant dense<0.000000e+00> : vector<16x32xf32>
    %15 = tpu.matmul %13, %14, %cst_11 {dimension_numbers = #tpu.dot_dimension_numbers<[1], [0], [0], [1], [0, 0, 1, 1], [], []>} : vector<16x64xbf16>, vector<64x32xbf16>, vector<16x32xf32> -> vector<16x32xf32>
    %16 = arith.addf %12, %15 : vector<16x32xf32>
    %c0_12 = arith.constant 0 : index
    %c0_13 = arith.constant 0 : index
    %17 = vector.load %arg10[%c0_12, %c0_13] : memref<16x32xf32, #tpu.memory_space<vmem>>, vector<16x32xf32>
    tpu.vector_store %arg10[%c0_12, %c0_13], %16 {strides = array<i32>} : memref<16x32xf32, #tpu.memory_space<vmem>>, vector<16x32xf32>,
    %c0_i32_14 = arith.constant 0 : i32
    %18 = arith.cmpi eq, %arg1, %c0_i32_14 : i32
    %19 = arith.extui %18 : i1 to i32
    %c0_i32_15 = arith.constant 0 : i32
    %20 = arith.cmpi ne, %19, %c0_i32_15 : i32
    scf.if %20 {
      %c0_16 = arith.constant 0 : index
      %c0_17 = arith.constant 0 : index
      %21 = vector.load %arg10[%c0_16, %c0_17] : memref<16x32xf32, #tpu.memory_space<vmem>>, vector<16x32xf32>
      %cst_18 = arith.constant dense<0.000000e+00> : vector<16xf32>
      %22 = vector.multi_reduction <add>, %21, %cst_18 [1] : vector<16x32xf32> to vector<16xf32>
      %23 = vector.shape_cast %22 : vector<16xf32> to vector<16x1xf32>
      %cst_19 = arith.constant 3.200000e+01 : f32
      %24 = vector.broadcast %cst_19 : f32 to vector<16x1xf32>
      %25 = arith.divf %23, %24 : vector<16x1xf32>
      %26 = vector.broadcast %25 : vector<16x1xf32> to vector<16x32xf32>
      %27 = arith.subf %21, %26 : vector<16x32xf32>
      %28 = arith.mulf %27, %27 : vector<16x32xf32>
      %cst_20 = arith.constant dense<0.000000e+00> : vector<16xf32>
      %29 = vector.multi_reduction <add>, %28, %cst_20 [1] : vector<16x32xf32> to vector<16xf32>
      %30 = vector.shape_cast %29 : vector<16xf32> to vector<16x1xf32>
      %cst_21 = arith.constant 3.200000e+01 : f32
      %31 = vector.broadcast %cst_21 : f32 to vector<16x1xf32>
      %32 = arith.divf %30, %31 : vector<16x1xf32>
      %33 = vector.broadcast %25 : vector<16x1xf32> to vector<16x32xf32>
      %34 = arith.subf %21, %33 : vector<16x32xf32>
      %cst_22 = arith.constant 9.99999974E-6 : f32
      %35 = vector.broadcast %cst_22 : f32 to vector<16x1xf32>
      %36 = arith.addf %32, %35 : vector<16x1xf32>
      %37 = math.rsqrt %36 : vector<16x1xf32>
      %38 = vector.broadcast %37 : vector<16x1xf32> to vector<16x32xf32>
      %39 = arith.mulf %34, %38 : vector<16x32xf32>
      %c0_23 = arith.constant 0 : index
      %c0_24 = arith.constant 0 : index
      %40 = vector.load %arg7[%c0_23, %c0_24] : memref<1x32xf32, #tpu.memory_space<vmem>>, vector<1x32xf32>
      %41 = vector.broadcast %40 : vector<1x32xf32> to vector<16x32xf32>
      %42 = arith.mulf %39, %41 : vector<16x32xf32>
      %c0_25 = arith.constant 0 : index
      %c0_26 = arith.constant 0 : index
      %43 = vector.load %arg8[%c0_25, %c0_26] : memref<1x32xf32, #tpu.memory_space<vmem>>, vector<1x32xf32>
      %44 = vector.broadcast %43 : vector<1x32xf32> to vector<16x32xf32>
      %45 = arith.addf %42, %44 : vector<16x32xf32>
      %c0_27 = arith.constant 0 : index
      %c0_28 = arith.constant 0 : index
      %46 = vector.load %arg9[%c0_27, %c0_28] : memref<16x32xf32, #tpu.memory_space<vmem>>, vector<16x32xf32>
      tpu.vector_store %arg9[%c0_27, %c0_28], %45 {strides = array<i32>} : memref<16x32xf32, #tpu.memory_space<vmem>>, vector<16x32xf32>,
    } else {
    }
    return
  }
  func.func @transform_0(%arg0: i32, %arg1: i32) -> (i32, i32) {
    %c0_i32 = arith.constant 0 : i32
    %c0_i32_0 = arith.constant 0 : i32
    return %arg0, %c0_i32 : i32, i32
  }
  func.func @transform_1(%arg0: i32, %arg1: i32) -> (i32, i32) {
    %c0_i32 = arith.constant 0 : i32
    %c0_i32_0 = arith.constant 0 : i32
    return %c0_i32, %arg1 : i32, i32
  }
  func.func @transform_2(%arg0: i32, %arg1: i32) -> (i32, i32) {
    %c0_i32 = arith.constant 0 : i32
    %c0_i32_0 = arith.constant 0 : i32
    return %c0_i32, %arg1 : i32, i32
  }
  func.func @transform_3(%arg0: i32, %arg1: i32) -> (i32, i32) {
    %c0_i32 = arith.constant 0 : i32
    %c0_i32_0 = arith.constant 0 : i32
    return %arg1, %c0_i32 : i32, i32
  }
  func.func @transform_4(%arg0: i32, %arg1: i32) -> (i32, i32) {
    %c0_i32 = arith.constant 0 : i32
    %c0_i32_0 = arith.constant 0 : i32
    %c0_i32_1 = arith.constant 0 : i32
    return %c0_i32, %c0_i32_0 : i32, i32
  }
  func.func @transform_5(%arg0: i32, %arg1: i32) -> (i32, i32) {
    %c0_i32 = arith.constant 0 : i32
    %c0_i32_0 = arith.constant 0 : i32
    %c0_i32_1 = arith.constant 0 : i32
    return %c0_i32, %c0_i32_0 : i32, i32
  }
  func.func @transform_6(%arg0: i32, %arg1: i32) -> (i32, i32) {
    %c0_i32 = arith.constant 0 : i32
    %c0_i32_0 = arith.constant 0 : i32
    %c0_i32_1 = arith.constant 0 : i32
    return %c0_i32, %c0_i32_0 : i32, i32
  }
  func.func @transform_7(%arg0: i32, %arg1: i32) -> (i32, i32) {
    %c0_i32 = arith.constant 0 : i32
    %c0_i32_0 = arith.constant 0 : i32
    return %arg0, %c0_i32 : i32, i32
  }
}

</mosaic_0001>

<bundles_post_ra>
// kernel: encoder_layer_forward.4
= control target key start
LH: loop header
LB: loop body
LE: loop exit
PB: predicated region body
PF: predicated region fallthrough
CT: control target
= control target key end

     0   :  { %8 = vsyncpa [#allocation3], 0  ;;  %s160_s12 = smov [#allocation2]   ;;  %s204_s0 = inlined_call_operand.vmem [shape: f32[16,32], index: 0, kind: input, shape index: {}]   ;;  %s205_s1 = inlined_call_operand.vmem [shape: bf16[32,96], index: 1, kind: input, shape index: {}]   ;;  %s206_s2 = inlined_call_operand.hbm [shape: f32[1,96], index: 2, kind: input, shape index: {}]   ;;  %s207_s3 = inlined_call_operand.vmem [shape: bf16[16,96], index: 3, kind: output, shape index: {}]  }
   0x1   :  { %s19_s13 = sshll.u32 %s160_s12, 4  ;;  %s20_s13 = int_to_ptr.vmem [resolvable:$true] %s19_s13 }
   0x2   :  { %s146_s14 = scalar_lea.vmem %s20_s13, 16  ;;  %s150_s15 = scalar_lea.vmem %s20_s13, 32 }
   0x3   :  { %p147_p0 = scmp.ne.s32.totalorder %s20_s13, %s146_s14  ;;  %p151_p1 = scmp.lt.s32.totalorder %s20_s13, %s20_s13 }
   0x4   :  { %p152_p2 = scmp.lt.s32.totalorder %s150_s15, %s146_s14 }
   0x6   :  { %p153_p3 = por %p152_p2, %p151_p1 }
   0x8   :  { %p154_p4 = pnand %p153_p3, %p147_p0 }
   0xa   :  { %157 = shalt.err (!%p154_p4)
}
   0xb   :  { %22 = dma.hbm_to_vmem [thread:$0]  %s206_s2, 16, %s20_s13, [#allocation3]  }
   0xc   :  { %158 = dma.done.wait [#allocation3], 16  }
   0xd   :  { %159 = vsyncadd [#allocation3], 4294967280  ;;  %v161_v0 = vmov 0.0   ;;  %vm162_vm0 = vmmov 0   ;;  %v136_v1 = vld [vmem:[%s205_s1 + $0x8] sm:$0xff]   ;;  %v137_v2 = vld [vmem:[%s205_s1] sm:$0xff]  }
   0xe   :  { %125 = vmatprep.subr.bf16.mxu0 %v161_v0  ;;  %129 = vmatprep.mubr.msk.bf16.mxu0 %vm162_vm0, %v161_v0  ;;  %v27_v3 = vld [vmem:[%s204_s0] sm:$0xff]  ;;  %v28_v4 = vld [vmem:[%s204_s0 + $0x8] sm:$0xff]  ;;  %vm53_vm1 = vcmask 261120   ;;  %vm106_vm2 = vcmask 781312  }
   0xf   :  { %126 = vmatpush3.bf16.msra.mxu0 %v136_v1  ;;  %v29_v5 = vpack.c.bf16 %v28_v4, %v27_v3  ;;  %v114_v6 = vld [vmem:[#allocation2] ss:$0 sm:$0xff] }
  0x10   :  { %127 = vmatprep.subr.bf16.mxu0 %v161_v0 }
  0x13   :  { %128 = vmatpush3.bf16.msra.mxu0 %v137_v2 }
  0x16   :  { %130 = vmatmul.mubr.msk.bf16.vlgmr.msra.gmra.mxu0 %vm53_vm1, %v29_v5 }
  0xd6   :  { %v91_v7 = vpop.f32.mrf.mxu0 }
  0xd7   :  { %v92_v8 = vadd.f32 %v114_v6, %v91_v7 }
  0xd8   :  { %v131_v9 = vpop.f32.mrf.mxu0 }
  0xd9   :  { %v120_v10 = vpack.c.bf16 %v92_v8, %v92_v8 }
  0xda   :  { %v94_v11 = vpop.f32.mrf.mxu0 }
  0xdb   :  { %107 = vst.msk [vmem:[%s207_s3] sm:$0xf] %vm106_vm2, %v120_v10  ;;  %v95_v12 = vadd.f32 %v114_v6, %v94_v11 }
  0xdc   :  { %v132_v13 = vpop.f32.mrf.mxu0 }
  0xdd   :  { %v121_v14 = vpack.c.bf16 %v95_v12, %v95_v12 }
  0xdf   :  { %108 = vst.msk [vmem:[%s207_s3 + $0x4] sm:$0xf] %vm106_vm2, %v121_v14 }
  0xe0   :  { %113 = vsyncpa [#allocation3], 1 }

// kernel: encoder_layer_forward.5
= control target key start
LH: loop header
LB: loop body
LE: loop exit
PB: predicated region body
PF: predicated region fallthrough
CT: control target
= control target key end

     0   :  { %s1023_s0 = inlined_call_operand.vmem [shape: bf16[2,4,8,8], index: 0, kind: input, shape index: {}]   ;;  %s1024_s1 = inlined_call_operand.vmem [shape: bf16[2,4,8,8], index: 1, kind: input, shape index: {}]   ;;  %s1025_s2 = inlined_call_operand.vmem [shape: bf16[2,4,8,8], index: 2, kind: input, shape index: {}]   ;;  %s1026_s3 = inlined_call_operand.vmem [shape: bf16[2,4,8,8], index: 3, kind: output, shape index: {0}]   ;;  %s1027_s4 = inlined_call_operand.hbm [shape: bf16[2,4,8,8], index: 4, kind: output, shape index: {1}]  }
   0x1   :  { %1028 = sst [smem:[#allocation5_spill]] %s1023_s0 }
   0x2   :  { %1029 = sst [smem:[#allocation6_spill]] %s1024_s1 }
   0x3   :  { %10 = vsyncpa [#allocation3], 0 }
   0x4   :  { %12 = vsyncpa [#allocation3 + $0x1], 0  ;;  %s877_s15 = smov 0   ;;  %s879_s16 = smov 0  }
   0x5   :  { %s881_s17 = smov 0   ;;  %s883_s18 = smov 0  }
   0x6   :  { %s885_s19 = smov 0   ;;  %s887_s20 = smov 0  }
   0x7   :  { %s889_s21 = smov 0   ;;  %s891_s22 = smov 0  }
   0x8 LB: > { %s641_s23 = sadd.s32 4294967295, %s847_s22   ;;  %s642_s24 = sadd.s32 4294967294, %s847_s22   ;;  %s847_s22 = sphi %s891_s22, %s18_s22   ;;  %s843_s21 = sphi %s889_s21, %s1040_s21   ;;  %s839_s20 = sphi %s887_s20, %s1039_s20   ;;  %s835_s19 = sphi %s885_s19, %s1038_s19   ;;  %s831_s18 = sphi %s883_s18, %s1037_s18   ;;  %s827_s17 = sphi %s881_s17, %s1036_s17   ;;  %s823_s16 = sphi %s879_s16, %s1035_s16   ;;  %s819_s15 = sphi %s877_s15, %s1034_s15  }
   0x9   : > { %s33_s25 = sadd.s32 1, %s839_s20  ;;  %s37_s26 = sadd.s32 1, %s843_s21 }
   0xa   : > { %p35_p0 = scmp.ge.s32.totalorder %s33_s25, 4  ;;  %p174_p1 = scmp.ne.s32.totalorder %s827_s17, %s823_s16 }
   0xb   : > { %p175_p2 = scmp.eq.s32.totalorder %s641_s23, 7  ;;  %p180_p5 = scmp.ne.s32.totalorder %s823_s16, %s819_s15 }
   0xc   : > { %s1042_s25 = smov (%p35_p0, %s33_s25), 0  ;;  %s1044_s26 = smov (!%p35_p0, %s37_s26), %s843_s21 }
   0xd   : > { %s158_s27 = ssub.s32 %s839_s20, %s1042_s25  ;;  %p928_p3 = por %p175_p2, %p174_p1 }
   0xe   : > { %p39_p4 = scmp.ge.s32.totalorder %s1044_s26, 2  ;;  %p181_p6 = scmp.eq.s32.totalorder %s642_s24, 7 }
   0xf   : > { %p645_p7 = scmp.ge.s32.totalorder %s847_s22, 1  ;;  %p235_p9 = scmp.lt.s32.totalorder %s847_s22, 9 }
  0x10   : > { %s1046_s26 = smov (%p39_p4, %s1044_s26), 0  ;;  %p937_p8 = por %p181_p6, %p180_p5 }
  0x11   : > { %s157_s30 = ssub.s32 %s843_s21, %s1046_s26  ;;  %s164_s5 = sadd.s32 1, %s827_s17 }
  0x12   : > { %s159_s6 = sor.u32 %s158_s27, %s157_s30  ;;  %p236_p10 = pnand %p645_p7, %p235_p9 }
  0x13   : > { %p162_p11 = scmp.eq.s32.totalorder %s159_s6, 0  ;;  %p294_p12 = scmp.lt.s32.totalorder (!%p236_p10), %s835_s19, 1 }
  0x14   : > { %239 = sbr.rel (%p236_p10) target bundleno = 746 (0x2ea), region = 32  ;;  %p296_p13 = scmp.lt.s32.totalorder (!%p236_p10), %s831_s18, 3 }
  0x15   : > { %s946_s7 = scalar_select %p162_p11, %s827_s17, %s164_s5  }
  0x16   : > { %s1032_s1 = sld [smem:[#allocation6_spill]] (!%p236_p10)  ;;  %s658_s13 = sshll.u32 (!%p236_p10), %s835_s19, 2 }
  0x17   : > { %s1033_s0 = sld [smem:[#allocation5_spill]] (!%p236_p10)  ;;  %s473_s14 = sadd.s32 (!%p236_p10), %s831_s18, %s658_s13 }
  0x19   : > { %v849_v0 = vmov 0.0   ;;  %vm850_vm0 = vmmov 0   ;;  %s295_s8 = scalar_select %p294_p12, %s835_s19, 1  ;;  %vm336_vm1 = vcmask 64512   ;;  %vm400_vm2 = vcmask 1043456  }
  0x1a   : > { %666 = vmatprep.subr.bf16.mxu0 %v849_v0  ;;  %668 = vmatprep.mubr.msk.bf16.mxu0 %vm850_vm0, %v849_v0  ;;  %s297_s9 = scalar_select %p296_p13, %s831_s18, 3  ;;  %vm395_vm3 = vcmask 60416  }
  0x1b   : > { %672 = vmatprep.subr.bf16.mxu1 %v849_v0  ;;  %674 = vmatprep.mubr.msk.bf16.mxu1 %vm850_vm0, %v849_v0  ;;  %s647_s10 = sshll.u32 %s295_s8, 2 }
  0x1c   : > { %s302_s11 = sadd.s32 %s647_s10, %s297_s9  ;;  %s291_s9 = sand.u32 1, %s823_s16  }
  0x1d   : > { %s952_s12 = sshll.u32 %s302_s11, 2  ;;  %s646_s10 = sshll.u32 %s291_s9, 2 }
  0x1e   : > { %s312_s23 = scalar_lea.vmem %s1032_s1, %s952_s12  ;;  %s304_s30 = scalar_lea.vmem %s1033_s0, %s952_s12 }
  0x1f   : > { %v334_v1 = vld [vmem:[%s312_s23] sm:$0xf]  ;;  %s320_s8 = scalar_lea.vmem %s1025_s2, %s952_s12  ;;  %s293_s11 = scalar_lea.vmem [#allocation2], %s646_s10 }
  0x20   : > { %v341_v2 = vsel %vm336_vm1, %v334_v1, 0  ;;  %v333_v3 = vld [vmem:[%s304_s30] sm:$0xf]  ;;  %s659_s23 = sshll.u32 %s473_s14, 6  ;;  %s477_s24 = sshll.u32 %s293_s11, 4  ;;  %s478_s24 = int_to_ptr.vmem [resolvable:$true] %s477_s24 }
  0x21   : > { %667 = vmatpush3.bf16.xpose.msra.mxu0 %v341_v2  ;;  %v335_v14 = vld [vmem:[%s320_s8] sm:$0xf]  ;;  %s475_s5 = scalar_lea.hbm %s1027_s4, %s659_s23  ;;  %s458_s6 = scalar_lea.sflag [#allocation3], %s291_s9 }
  0x22   : > { %v402_v15 = vsel %vm400_vm2, %v335_v14, 0  ;;  %s755_s8 = scalar_lea.vmem %s478_s24, 64  ;;  %s851_s0 = smov [#allocation2]  }
  0x23   : > { %673 = vmatpush3.bf16.msra.mxu1 %v402_v15  ;;  %p756_p0 = scmp.ne.s32.totalorder %s478_s24, %s755_s8  ;;  %s759_s1 = sshll.u32 %s851_s0, 4  ;;  %s760_s1 = int_to_ptr.vmem [resolvable:$false] %s759_s1 }
  0x24   : > { %s761_s10 = scalar_lea.vmem %s760_s1, 128  ;;  %p762_p4 = scmp.lt.s32.totalorder %s478_s24, %s760_s1 }
  0x25   : > { %p757_p1 = pnand %p756_p0, %p928_p3  ;;  %p763_p5 = scmp.lt.s32.totalorder %s761_s10, %s755_s8 }
  0x27   : > { %p758_p2 = pneg %p757_p1  ;;  %p764_p6 = por %p763_p5, %p762_p4 }
  0x28   : > { %669 = vmatmul.mubr.msk.bf16.vlgmr.msra.gmra.mxu0 %vm336_vm1, %v333_v3 }
  0x29   : > { %p765_p7 = pnand %p764_p6, %p758_p2 }
  0xe8   : > { %v377_v4 = vpop.f32.mrf.mxu0 }
  0xe9   : > { %v383_v5 = vsel %vm336_vm1, %v377_v4, -inf }
  0xea   : > { %384 = vmax.xlane.f32.xlu0 %v383_v5  ;;  %v670_v6 = vpop.f32.mrf.mxu0 }
  0xec   : > { %v380_v7 = vpop.f32.mrf.mxu0 }
  0xee   : > { %v671_v8 = vpop.f32.mrf.mxu0 }
 0x173   : > { %v385_v9 = vpop.xlane.xlu0 %384 }
 0x174   : > { %v386_v10 = vsub.f32 %v377_v4, %v385_v9 }
 0x176   : > { %v387_v11 = vmul.f32 1.442695, %v386_v10 }
 0x178   : > { %751 = vpow2.f32 %v387_v11 }
 0x185   : > { %v752_v12 = vpop.eup %751 }
 0x186   : > { %v389_v13 = vsel %vm336_vm1, %v752_v12, 0.0 }
 0x187   : > { %390 = vadd.xlane.f32.xlu0 %v389_v13 }
 0x210   : > { %v391_v16 = vpop.xlane.xlu0 %390 }
 0x211   : > { %753 = vrcp.f32 %v391_v16 }
 0x21e   : > { %v754_v17 = vpop.eup %753 }
 0x21f   : > { %v393_v18 = vmul.f32 %v754_v17, %v752_v12 }
 0x221   : > { %v394_v19 = vpack.c.bf16 %v393_v18, %v393_v18 }
 0x223   : > { %675 = vmatmul.mubr.msk.bf16.vlgmr.msra.gmra.mxu1 %vm336_vm1, %v394_v19  ;;  %396 = vst.msk [vmem:[%s293_s11] sm:$0xf] %vm395_vm3, %v394_v19 }
 0x224   : > { %768 = shalt.err (!%p765_p7)
}
 0x225   : > { %s769_s18 = scalar_lea.hbm %s475_s5, 64  ;;  %s773_s11 = scalar_lea.hbm %s1027_s4, 512 }
 0x226   : > { %p770_p9 = scmp.ne.s32.totalorder %s475_s5, %s769_s18  ;;  %p774_p12 = scmp.lt.s32.totalorder %s475_s5, %s1027_s4 }
 0x227   : > { %p775_p13 = scmp.lt.s32.totalorder %s773_s11, %s769_s18 }
 0x228   : > { %p771_p10 = pnand %p770_p9, %p928_p3 }
 0x229   : > { %p776_p0 = por %p775_p13, %p774_p12 }
 0x22a   : > { %p772_p11 = pneg %p771_p10 }
 0x22c   : > { %p777_p1 = pnand %p776_p0, %p772_p11 }
 0x22e   : > { %780 = shalt.err (!%p777_p1)
}
 0x22f   : > { %678 = dma.vmem_to_hbm [thread:$0]  (%p928_p3), %s478_s24, 64, %s475_s5, %s458_s6  }
 0x230   : > { %s331_s23 = scalar_lea.vmem %s1026_s3, %s952_s12 }
 0x2e3   : > { %v438_v20 = vpop.f32.mrf.mxu1 }
 0x2e4   : > { %v444_v21 = vpack.c.bf16 %v438_v20, %v438_v20 }
 0x2e5   : > { %v676_v22 = vpop.f32.mrf.mxu1 }
 0x2e6   : > { %445 = vst.msk [vmem:[%s331_s23] sm:$0xf] %vm395_vm3, %v444_v21 }
 0x2e7   : > { %v441_v23 = vpop.f32.mrf.mxu1 }
 0x2e9   : > { %v677_v24 = vpop.f32.mrf.mxu1 }
 0x2ea PF: > { %p684_p2 = scmp.ge.s32.totalorder %s847_s22, 2  ;;  %s503_s27 = sand.u32 1, %s819_s15  }
 0x2eb   : > { %s504_s28 = scalar_lea.sflag [#allocation3], %s503_s27 }
 0x2ec   : > { %p681_p4 = pnand %p684_p2, %p937_p8 }
 0x2ee   : > { %p682_p3 = pneg %p681_p4 }
 0x2f0   : > { %814 = dma.done.wait (%p682_p3), %s504_s28, 64  }
 0x2f1   : > { %816 = vsyncadd (%p682_p3), %s504_s28, 4294967232  ;;  %s18_s22 = sadd.s32 1, %s847_s22   ;;  %s1034_s15 = smov %s823_s16 }
 0x2f2   : > { %p15_p5 = scmp.ge.s32.totalorder %s18_s22, 10   ;;  %s1035_s16 = smov %s827_s17 }
 0x2f3   : > { %s1036_s17 = smov %s946_s7  ;;  %s1037_s18 = smov %s839_s20 }
 0x2f4   : > { %s1038_s19 = smov %s843_s21  ;;  %s1039_s20 = smov %s1042_s25 }
 0x2f5   : > { %s1040_s21 = smov %s1046_s26  ;;  %17 = sbr.rel (!%p15_p5) target bundleno = 8 (0x8), region = 85 }
 0x2fa   :  { %509 = vsyncpa [#allocation3], 1 }
 0x2fb   :  { %511 = vsyncpa [#allocation3 + $0x1], 1 }

// kernel: encoder_layer_forward.6
= control target key start
LH: loop header
LB: loop body
LE: loop exit
PB: predicated region body
PF: predicated region fallthrough
CT: control target
= control target key end

     0   :  { %v181_v0 = vmov 0.0   ;;  %vm182_vm0 = vmmov 0   ;;  %vm54_vm1 = vcmask 261120   ;;  %s255_s2 = inlined_call_operand.vmem [shape: bf16[32,32], index: 2, kind: input, shape index: {}]   ;;  %s256_s0 = inlined_call_operand.vmem [shape: bf16[16,32], index: 0, kind: input, shape index: {}]   ;;  %s257_s3 = inlined_call_operand.vmem [shape: f32[1,32], index: 3, kind: input, shape index: {}]   ;;  %s258_s1 = inlined_call_operand.vmem [shape: f32[16,32], index: 1, kind: input, shape index: {}]   ;;  %s259_s4 = inlined_call_operand.vmem [shape: f32[1,32], index: 4, kind: input, shape index: {}]   ;;  %s260_s5 = inlined_call_operand.vmem [shape: f32[1,32], index: 5, kind: input, shape index: {}]   ;;  %s261_s6 = inlined_call_operand.vmem [shape: f32[16,32], index: 6, kind: output, shape index: {}]  }
   0x1   :  { %164 = vmatprep.subr.bf16.mxu0 %v181_v0  ;;  %v174_v1 = vld [vmem:[%s255_s2 + $0x8] sm:$0xff]   ;;  %168 = vmatprep.mubr.msk.bf16.mxu0 %vm182_vm0, %v181_v0  ;;  %v175_v2 = vld [vmem:[%s255_s2] sm:$0xff]  }
   0x2   :  { %165 = vmatpush3.bf16.msra.mxu0 %v174_v1  ;;  %v176_v3 = vld [vmem:[%s256_s0] sm:$0xff]   ;;  %v100_v11 = vld [vmem:[%s258_s1 + $0x8] sm:$0xff] }
   0x3   :  { %166 = vmatprep.subr.bf16.mxu0 %v181_v0  ;;  %v154_v4 = vld [vmem:[%s257_s3] ss:$0 sm:$0xff] }
   0x4   :  { %v99_v6 = vld [vmem:[%s258_s1] sm:$0xff] }
   0x5   :  { %v159_v34 = vld [vmem:[%s259_s4] ss:$0 sm:$0xff] }
   0x6   :  { %167 = vmatpush3.bf16.msra.mxu0 %v175_v2  ;;  %v160_v36 = vld [vmem:[%s260_s5] ss:$0 sm:$0xff] }
   0x9   :  { %169 = vmatmul.mubr.msk.bf16.vlgmr.msra.gmra.mxu0 %vm54_vm1, %v176_v3 }
  0xc9   :  { %v92_v5 = vpop.f32.mrf.mxu0 }
  0xca   :  { %v93_v7 = vadd.f32 %v154_v4, %v92_v5 }
  0xcb   :  { %v170_v8 = vpop.f32.mrf.mxu0 }
  0xcc   :  { %v101_v9 = vadd.f32 %v99_v6, %v93_v7 }
  0xcd   :  { %v95_v10 = vpop.f32.mrf.mxu0 }
  0xce   :  { %v96_v12 = vadd.f32 %v154_v4, %v95_v10  ;;  %v103_v13 = vsel %vm54_vm1, %v101_v9, 0.0 }
  0xcf   :  { %104 = vadd.xlane.f32.xlu0 %v103_v13  ;;  %v171_v14 = vpop.f32.mrf.mxu0 }
  0xd0   :  { %v102_v15 = vadd.f32 %v100_v11, %v96_v12 }
  0xd2   :  { %v106_v16 = vsel %vm54_vm1, %v102_v15, 0.0 }
  0xd3   :  { %107 = vadd.xlane.f32.xlu0 %v106_v16 }
 0x158   :  { %v105_v17 = vpop.xlane.xlu0 %104 }
 0x159   :  { %v110_v18 = vmul.f32 0.03125, %v105_v17 }
 0x15b   :  { %v112_v19 = vsub.f32 %v101_v9, %v110_v18 }
 0x15c   :  { %v108_v20 = vpop.xlane.xlu0 %107 }
 0x15d   :  { %v111_v21 = vmul.f32 0.03125, %v108_v20  ;;  %v114_v22 = vmul.f32 %v112_v19, %v112_v19 }
 0x15f   :  { %v113_v23 = vsub.f32 %v102_v15, %v111_v21  ;;  %v116_v24 = vsel %vm54_vm1, %v114_v22, 0.0 }
 0x160   :  { %117 = vadd.xlane.f32.xlu1 %v116_v24 }
 0x161   :  { %v115_v25 = vmul.f32 %v113_v23, %v113_v23 }
 0x163   :  { %v119_v26 = vsel %vm54_vm1, %v115_v25, 0.0 }
 0x164   :  { %120 = vadd.xlane.f32.xlu1 %v119_v26 }
 0x1e9   :  { %v118_v27 = vpop.xlane.xlu1 %117 }
 0x1ea   :  { %v122_v28 = vmul.f32 0.03125, %v118_v27 }
 0x1ec   :  { %v124_v29 = vadd.f32 1e-05, %v122_v28 }
 0x1ed   :  { %v121_v30 = vpop.xlane.xlu1 %120 }
 0x1ee   :  { %177 = vrsqrt.f32 %v124_v29  ;;  %v123_v31 = vmul.f32 0.03125, %v121_v30 }
 0x1f0   :  { %v125_v32 = vadd.f32 1e-05, %v123_v31 }
 0x1f2   :  { %179 = vrsqrt.f32 %v125_v32 }
 0x1fb   :  { %v178_v33 = vpop.eup %177 }
 0x1fc   :  { %v128_v35 = vmul.f32 %v178_v33, %v112_v19 }
 0x1fe   :  { %v137_v37 = vmul.f32 %v159_v34, %v128_v35 }
 0x1ff   :  { %v180_v38 = vpop.eup %179 }
 0x200   :  { %v146_v39 = vadd.f32 %v160_v36, %v137_v37  ;;  %v129_v40 = vmul.f32 %v180_v38, %v113_v23 }
 0x202   :  { %148 = vst.msk [vmem:[%s261_s6] sm:$0xff] %vm54_vm1, %v146_v39  ;;  %v138_v41 = vmul.f32 %v159_v34, %v129_v40 }
 0x204   :  { %v147_v42 = vadd.f32 %v160_v36, %v138_v41 }
 0x206   :  { %149 = vst.msk [vmem:[%s261_s6 + $0x8] sm:$0xff] %vm54_vm1, %v147_v42 }

// kernel: encoder_layer_forward.7
= control target key start
LH: loop header
LB: loop body
LE: loop exit
PB: predicated region body
PF: predicated region fallthrough
CT: control target
= control target key end

     0   :  { %v346_v1 = vmov 0.0   ;;  %vm347_vm0 = vmmov 0   ;;  %vm43_vm1 = vcmask 261120   ;;  %s441_s0 = inlined_call_operand.vmem [shape: f32[16,32], index: 0, kind: input, shape index: {}]   ;;  %s442_s1 = inlined_call_operand.vmem [shape: bf16[32,64], index: 1, kind: input, shape index: {}]   ;;  %s443_s2 = inlined_call_operand.vmem [shape: f32[1,64], index: 2, kind: input, shape index: {}]   ;;  %s444_s3 = inlined_call_operand.vmem [shape: bf16[64,32], index: 3, kind: input, shape index: {}]   ;;  %s445_s4 = inlined_call_operand.vmem [shape: f32[1,32], index: 4, kind: input, shape index: {}]   ;;  %s446_s5 = inlined_call_operand.vmem [shape: f32[1,32], index: 5, kind: input, shape index: {}]   ;;  %s447_s6 = inlined_call_operand.vmem [shape: f32[1,32], index: 6, kind: input, shape index: {}]   ;;  %s448_s7 = inlined_call_operand.hbm [shape: f32[16,32], index: 7, kind: output, shape index: {}]  }
   0x1   :  { %v314_v0 = vld [vmem:[%s442_s1 + $0x8] sm:$0xff]   ;;  %289 = vmatprep.subr.bf16.mxu0 %v346_v1  ;;  %v315_v2 = vld [vmem:[%s442_s1] sm:$0xff]   ;;  %297 = vmatprep.subr.bf16.mxu1 %v346_v1  ;;  %v316_v8 = vld [vmem:[%s444_s3 + $0x18] sm:$0xff]  }
   0x2   :  { %290 = vmatpush3.bf16.msra.mxu0 %v314_v0  ;;  %293 = vmatprep.mubr.msk.bf16.mxu0 %vm347_vm0, %v346_v1  ;;  %v28_v3 = vld [vmem:[%s441_s0] sm:$0xff]  ;;  %v29_v4 = vld [vmem:[%s441_s0 + $0x8] sm:$0xff] }
   0x3   :  { %v269_v5 = vld [vmem:[%s445_s4] ss:$0 sm:$0xff]  ;;  %291 = vmatprep.subr.bf16.mxu0 %v346_v1  ;;  %305 = vmatprep.mubr.msk.bf16.mxu1 %vm347_vm0, %v346_v1  ;;  %v46_v9 = vpack.c.bf16 %v29_v4, %v28_v3 }
   0x4   :  { %v41_v6 = vadd.f32 %v269_v5, %v28_v3  ;;  %v42_v7 = vadd.f32 %v269_v5, %v29_v4  ;;  %298 = vmatpush3.bf16.msra.mxu1 %v316_v8 }
   0x5   :  { %299 = vmatprep.subr.bf16.mxu1 %v346_v1 }
   0x6   :  { %44 = vst.msk [vmem:[#allocation2] sm:$0xff] %vm43_vm1, %v41_v6  ;;  %45 = vst.msk [vmem:[#allocation2 + $0x8] sm:$0xff] %vm43_vm1, %v42_v7  ;;  %292 = vmatpush3.bf16.msra.mxu0 %v315_v2 }
   0x7   :  { %12 = vsyncpa [#allocation4], 0  ;;  %v317_v10 = vld [vmem:[%s444_s3 + $0x10] sm:$0xff]   ;;  %v318_v11 = vld [vmem:[%s444_s3 + $0x8] sm:$0xff]   ;;  %vm152_vm2 = vcmask 523264   ;;  %s348_s20 = smov [#allocation3]  }
   0x8   :  { %300 = vmatpush3.bf16.msra.mxu1 %v317_v10  ;;  %v319_v12 = vld [vmem:[%s444_s3] sm:$0xff]   ;;  %s258_s21 = sshll.u32 %s348_s20, 4  ;;  %s259_s21 = int_to_ptr.vmem [resolvable:$true] %s258_s21 }
   0x9   :  { %294 = vmatmul.mubr.msk.bf16.vlgmr.msra.gmra.mxu0 %vm43_vm1, %v46_v9  ;;  %301 = vmatprep.subr.bf16.mxu1 %v346_v1  ;;  %v270_v13 = vld [vmem:[%s443_s2] ss:$0 sm:$0xff]  ;;  %s324_s22 = scalar_lea.vmem %s259_s21, 256  ;;  %p329_p1 = scmp.lt.s32.totalorder %s259_s21, %s259_s21 }
   0xa   :  { %v279_v52 = vld [vmem:[%s446_s5] ss:$0 sm:$0xff]  ;;  %p325_p0 = scmp.ne.s32.totalorder %s259_s21, %s324_s22  ;;  %p330_p2 = scmp.lt.s32.totalorder %s324_s22, %s324_s22 }
   0xb   :  { %v280_v54 = vld [vmem:[%s447_s6] ss:$0 sm:$0xff] }
   0xc   :  { %302 = vmatpush3.bf16.msra.mxu1 %v318_v11  ;;  %p331_p3 = por %p330_p2, %p329_p1 }
   0xd   :  { %303 = vmatprep.subr.bf16.mxu1 %v346_v1  ;;  %v117_v23 = vld [vmem:[#allocation2] sm:$0xff]  ;;  %v118_v27 = vld [vmem:[#allocation2 + $0x8] sm:$0xff] }
   0xe   :  { %p332_p4 = pnand %p331_p3, %p325_p0 }
  0x10   :  { %304 = vmatpush3.bf16.msra.mxu1 %v319_v12 }
  0xc9   :  { %v108_v14 = vpop.f32.mrf.mxu0 }
  0xca   :  { %v109_v16 = vadd.f32 %v270_v13, %v108_v14 }
  0xcb   :  { %v295_v15 = vpop.f32.mrf.mxu0 }
  0xcc   :  { %v115_v20 = vmax.f32 %v109_v16, 0.0 }
  0xcd   :  { %v111_v17 = vpop.f32.mrf.mxu0 }
  0xce   :  { %v112_v18 = vadd.f32 %v270_v13, %v111_v17 }
  0xcf   :  { %v296_v19 = vpop.f32.mrf.mxu0 }
  0xd0   :  { %v116_v21 = vmax.f32 %v112_v18, 0.0 }
  0xd2   :  { %v119_v22 = vpack.c.bf16 %v116_v21, %v115_v20 }
  0xd4   :  { %306 = vmatmul.mubr.msk.bf16.vlgmr.msra.gmra.mxu1 %vm152_vm2, %v119_v22 }
 0x194   :  { %v190_v24 = vpop.f32.mrf.mxu1 }
 0x195   :  { %v197_v25 = vadd.f32 %v190_v24, %v117_v23 }
 0x196   :  { %v307_v26 = vpop.f32.mrf.mxu1 }
 0x197   :  { %199 = vst.msk [vmem:[#allocation2] sm:$0xff] %vm43_vm1, %v197_v25 }
 0x198   :  { %v193_v28 = vpop.f32.mrf.mxu1 }
 0x199   :  { %v198_v29 = vadd.f32 %v193_v28, %v118_v27 }
 0x19a   :  { %v308_v30 = vpop.f32.mrf.mxu1 }
 0x19b   :  { %200 = vst.msk [vmem:[#allocation2 + $0x8] sm:$0xff] %vm43_vm1, %v198_v29 }
 0x19e   :  { %v204_v31 = vld [vmem:[#allocation2] sm:$0xff] }
 0x19f   :  { %v206_v32 = vsel %vm43_vm1, %v204_v31, 0.0 }
 0x1a0   :  { %207 = vadd.xlane.f32.xlu0 %v206_v32 }
 0x1a2   :  { %v205_v33 = vld [vmem:[#allocation2 + $0x8] sm:$0xff] }
 0x1a3   :  { %v209_v34 = vsel %vm43_vm1, %v205_v33, 0.0 }
 0x1a4   :  { %210 = vadd.xlane.f32.xlu0 %v209_v34 }
 0x229   :  { %v208_v35 = vpop.xlane.xlu0 %207 }
 0x22a   :  { %v213_v36 = vmul.f32 0.03125, %v208_v35 }
 0x22c   :  { %v215_v37 = vsub.f32 %v204_v31, %v213_v36 }
 0x22d   :  { %v211_v38 = vpop.xlane.xlu0 %210 }
 0x22e   :  { %v214_v39 = vmul.f32 0.03125, %v211_v38  ;;  %v217_v40 = vmul.f32 %v215_v37, %v215_v37 }
 0x230   :  { %v216_v41 = vsub.f32 %v205_v33, %v214_v39  ;;  %v219_v42 = vsel %vm43_vm1, %v217_v40, 0.0 }
 0x231   :  { %220 = vadd.xlane.f32.xlu1 %v219_v42 }
 0x232   :  { %v218_v43 = vmul.f32 %v216_v41, %v216_v41 }
 0x234   :  { %v222_v44 = vsel %vm43_vm1, %v218_v43, 0.0 }
 0x235   :  { %223 = vadd.xlane.f32.xlu1 %v222_v44 }
 0x2ba   :  { %v221_v45 = vpop.xlane.xlu1 %220 }
 0x2bb   :  { %v225_v46 = vmul.f32 0.03125, %v221_v45 }
 0x2bd   :  { %v227_v47 = vadd.f32 1e-05, %v225_v46 }
 0x2be   :  { %v224_v48 = vpop.xlane.xlu1 %223 }
 0x2bf   :  { %320 = vrsqrt.f32 %v227_v47  ;;  %v226_v49 = vmul.f32 0.03125, %v224_v48 }
 0x2c1   :  { %v228_v50 = vadd.f32 1e-05, %v226_v49 }
 0x2c3   :  { %322 = vrsqrt.f32 %v228_v50 }
 0x2cc   :  { %v321_v51 = vpop.eup %320 }
 0x2cd   :  { %v231_v53 = vmul.f32 %v321_v51, %v215_v37 }
 0x2cf   :  { %v240_v55 = vmul.f32 %v279_v52, %v231_v53 }
 0x2d0   :  { %v323_v56 = vpop.eup %322 }
 0x2d1   :  { %v232_v57 = vmul.f32 %v323_v56, %v216_v41  ;;  %v249_v58 = vadd.f32 %v280_v54, %v240_v55 }
 0x2d3   :  { %v241_v59 = vmul.f32 %v279_v52, %v232_v57  ;;  %251 = vst.msk [vmem:[#allocation3] sm:$0xff] %vm43_vm1, %v249_v58 }
 0x2d5   :  { %v250_v60 = vadd.f32 %v280_v54, %v241_v59 }
 0x2d7   :  { %252 = vst.msk [vmem:[#allocation3 + $0x8] sm:$0xff] %vm43_vm1, %v250_v60 }
 0x2d8   :  { %335 = shalt.err (!%p332_p4)
}
 0x2d9   :  { %s349_s5 = smov 128   ;;  %s350_s6 = smov 8  }
 0x2da   :  { %264 = dma.vmem_to_hbm [thread:$0]  %s259_s21, 256, %s448_s7, [#allocation4], %s349_s5, %s349_s5, %s350_s6  }
 0x2db   :  { %344 = dma.done.wait [#allocation4], 256  }
 0x2dc   :  { %345 = vsyncadd [#allocation4], 4294967040 }
 0x2dd   :  { %268 = vsyncpa [#allocation4], 1 }

</bundles_post_ra>
